<compile_context>
chip_gen: v7x
topology: tpu7x:2x2x1
jax: 0.10.0
libtpu: 0.0.40
codegen_flags: <defaults>
</compile_context>

<pallas_src>
import functools

import jax
import jax.numpy as jnp
from jax.experimental import pallas as pl
from jax.experimental.pallas import tpu as pltpu

HIDDEN = 64                 # PyTorch module's hidden width
LANE = 128                  # TPU lane width; weight/output feature dims padded to this
_BF16_SUBLANE = 16          # bf16 packs 16 sublanes per vreg
# VMEM-safe row cap per grid step (fits v5e's 16 MiB default scoped VMEM;
# do not raise past ~8192 on v7x's 64 MiB physical without re-deriving).
_MAX_ROWS_PER_STEP = 2048


def _round_up(n, m):
    return (n + m - 1) // m * m


# ---------------------------------------------------------------------------
# Kernel
# ---------------------------------------------------------------------------
def dqn_kernel(x_ref, w_ref, b_ref, o_ref):
    """Fused 3-layer MLP.

    x_ref: (tb, in_dim)   bf16   unpadded activations (lane dim = in_dim)
    w_ref: (3, K, 128)    bf16   packed, zero-padded weights, [in, out] layout
    b_ref: (3, 1, 128)    f32    packed, zero-padded biases
    o_ref: (tb, 128)      f32/bf16  lane-dense padded output
    """
    k_dim = w_ref.shape[1]   # contraction dim of the weight slab (NOT x_ref.shape[1])

    def layer(h_bf16, l, relu):
        # Zero-pad the contraction dim in-registers when the activation is
        # narrower than the weight slab (layer 0: in_dim -> K).  Padded weight
        # rows are zero, so the result is unchanged and x stays unpadded in HBM.
        if h_bf16.shape[1] != k_dim:
            h_bf16 = jnp.pad(h_bf16, ((0, 0), (0, k_dim - h_bf16.shape[1])))
        y = jnp.dot(h_bf16, w_ref[l], preferred_element_type=jnp.float32) + b_ref[l]
        return jnp.maximum(y, 0.0) if relu else y

    h1 = layer(x_ref[...], 0, relu=True).astype(jnp.bfloat16)
    h2 = layer(h1, 1, relu=True).astype(jnp.bfloat16)
    # Final matmul + bias + cast fused into the store (lane-dense vst).
    o_ref[...] = layer(h2, 2, relu=False).astype(o_ref.dtype)


# ---------------------------------------------------------------------------
# Wrapper
# ---------------------------------------------------------------------------
@functools.partial(jax.jit, static_argnames=("batch_tile", "out_dtype"))
def dqn_forward(x, packed_params, *, batch_tile=None, out_dtype=jnp.float32):
    """Fused DQN forward pass.

    packed_params = (W, Bv) with W: (3, K, 128) bf16, Bv: (3, 1, 128) f32.

    Returns the row/lane-padded Q-value block of shape (round_up(B, tile), 128).
    The first `out_dim` lanes of the first B rows are the real Q-values;
    consumers should mask / argmax over those lanes rather than slicing
    (slicing would add an extra XLA copy launch).
    """
    W, Bv = packed_params
    bsz, in_dim = x.shape

    if batch_tile is None:
        # >= 1024 rows: two grid steps so both v7x TensorCores get work
        # ("parallel" semantics); extra ~0.35 us/step is negligible on v5e/v6e.
        rows = pl.cdiv(bsz, 2) if bsz >= 1024 else bsz
        tb = min(_round_up(rows, _BF16_SUBLANE), _MAX_ROWS_PER_STEP)
    else:
        tb = min(_round_up(int(batch_tile), _BF16_SUBLANE), _MAX_ROWS_PER_STEP)
    bp = _round_up(bsz, tb)

    # Cast-only when the batch tiles evenly (common replay sizes); pad rows
    # only when genuinely needed.  No feature-dim padding of x here.
    xb = x.astype(jnp.bfloat16)
    if bp != bsz:
        xb = jnp.pad(xb, ((0, bp - bsz), (0, 0)))

    return pl.pallas_call(
        dqn_kernel,
        out_shape=jax.ShapeDtypeStruct((bp, LANE), out_dtype),
        grid_spec=pltpu.PrefetchScalarGridSpec(
            num_scalar_prefetch=0,
            grid=(bp // tb,),
            in_specs=[
                # x tile: last dim == full array dim (in_dim), so it satisfies
                # the (8,128) divisibility rule without lane padding.
                pl.BlockSpec((tb, in_dim), lambda i: (i, 0)),
                # Weights/biases: constant index_map -> resident, no re-DMA.
                # TODO(synk): pipeline_mode=pl.Buffered(1) would shave the spare
                # ~96 KiB second buffer; left at default to stay conservative.
                pl.BlockSpec(W.shape, lambda i: (0, 0, 0)),
                pl.BlockSpec(Bv.shape, lambda i: (0, 0, 0)),
            ],
            out_specs=pl.BlockSpec((tb, LANE), lambda i: (i, 0)),  # lane-dense store
        ),
        compiler_params=pltpu.CompilerParams(
            dimension_semantics=("parallel",),
        ),
    )(xb, W, Bv)


# ---------------------------------------------------------------------------
# Parameters
# ---------------------------------------------------------------------------
def init_params(key, input_size, output_size):
    """PyTorch-style uniform(-1/sqrt(fan_in), 1/sqrt(fan_in)) init.

    Weights stored as [in, out] (transposed vs nn.Linear) so y = x @ W + b.
    Returns unpacked f32 params (for the reference / external use).
    """
    ks = jax.random.split(key, 6)

    def lin(kw, kb, fan_in, fan_out):
        bound = 1.0 / jnp.sqrt(jnp.float32(fan_in))
        w = jax.random.uniform(kw, (fan_in, fan_out), jnp.float32, -bound, bound)
        b = jax.random.uniform(kb, (fan_out,), jnp.float32, -bound, bound)
        return w, b

    w1, b1 = lin(ks[0], ks[1], input_size, HIDDEN)
    w2, b2 = lin(ks[2], ks[3], HIDDEN, HIDDEN)
    w3, b3 = lin(ks[4], ks[5], HIDDEN, output_size)
    return (w1, b1, w2, b2, w3, b3)


def pack_params(params):
    """Pack 6 arrays into one lane-padded bf16 weight slab + one f32 bias slab."""
    w1, b1, w2, b2, w3, b3 = params
    in_dim = w1.shape[0]
    out_dim = w3.shape[1]
    k_dim = _round_up(max(in_dim, HIDDEN), LANE)   # = 128 for typical DQN inputs

    W = jnp.zeros((3, k_dim, LANE), jnp.float32)
    W = W.at[0, :in_dim, :HIDDEN].set(w1)
    W = W.at[1, :HIDDEN, :HIDDEN].set(w2)
    W = W.at[2, :HIDDEN, :out_dim].set(w3)

    Bv = jnp.zeros((3, 1, LANE), jnp.float32)
    Bv = Bv.at[0, 0, :HIDDEN].set(b1)
    Bv = Bv.at[1, 0, :HIDDEN].set(b2)
    Bv = Bv.at[2, 0, :out_dim].set(b3)

    return W.astype(jnp.bfloat16), Bv


# ---------------------------------------------------------------------------
# Reference (mirrors kernel precision: bf16 MXU operands, f32 accumulation)
# ---------------------------------------------------------------------------
def reference_forward(x, params):
    w1, b1, w2, b2, w3, b3 = params
    bf = lambda a: a.astype(jnp.bfloat16)
    h1 = jnp.maximum(jnp.dot(bf(x), bf(w1), preferred_element_type=jnp.float32) + b1, 0.0)
    h2 = jnp.maximum(jnp.dot(bf(h1), bf(w2), preferred_element_type=jnp.float32) + b2, 0.0)
    return jnp.dot(bf(h2), bf(w3), preferred_element_type=jnp.float32) + b3


if __name__ == "__main__":
    key = jax.random.PRNGKey(0)
    k_x, k_p = jax.random.split(key)

    input_size = 16   # stands in for X_train.shape[1]
    n_actions = 10
    batch = 8

    x = jax.random.normal(k_x, (batch, input_size), dtype=jnp.float32)
    raw_params = init_params(k_p, input_size, n_actions)
    packed = pack_params(raw_params)

    out_padded = dqn_forward(x, packed)
    out_padded = jax.block_until_ready(out_padded)

    # Consumers normally argmax/mask over the first n_actions lanes directly;
    # slice here only for the correctness check.
    out = out_padded[:batch, :n_actions]

    ref = reference_forward(x, raw_params)
    assert out.shape == (batch, n_actions)
    # bf16 MXU operands -> compare against a precision-matched reference.
    assert jnp.allclose(out, ref, atol=2e-3, rtol=2e-3), "mismatch vs JAX reference"

    # TODO(synk): StandardScaler preprocessing / replay buffer / optimizer from the
    # original script are training infrastructure, not part of DQNetwork.forward.
    print("KERNEL_OK")
</pallas_src>

<mosaic_0001>
module attributes {stable_mosaic.version = 11 : i64} {
  func.func @dqn_kernel(%arg0: i32, %arg1: memref<16x16xbf16, #tpu.memory_space<vmem>>, %arg2: memref<3x128x128xbf16, #tpu.memory_space<vmem>>, %arg3: memref<3x1x128xf32, #tpu.memory_space<vmem>>, %arg4: memref<16x128xf32, #tpu.memory_space<vmem>>) attributes {dimension_semantics = [#tpu.dimension_semantics<parallel>], iteration_bounds = array<i64: 1>, scalar_prefetch = 0 : i64, scratch_operands = 0 : i64, tpu.core_type = #tpu.core_type<tc>, window_params = [{transform_indices = @transform_0, window_bounds = array<i64: 16, 16>}, {pipeline_mode = #tpu.pipeline_mode<synchronous>, transform_indices = @transform_1, window_bounds = array<i64: 3, 128, 128>}, {pipeline_mode = #tpu.pipeline_mode<synchronous>, transform_indices = @transform_2, window_bounds = array<i64: 3, 1, 128>}, {transform_indices = @transform_3, window_bounds = array<i64: 16, 128>}]} {
    %c0 = arith.constant 0 : index
    %c0_0 = arith.constant 0 : index
    %0 = vector.load %arg1[%c0, %c0_0] : memref<16x16xbf16, #tpu.memory_space<vmem>>, vector<16x16xbf16>
    %c0_i32 = arith.constant 0 : i32
    %1 = arith.sitofp %c0_i32 : i32 to bf16
    %2 = vector.broadcast %1 : bf16 to vector<16x112xbf16>
    %3 = tpu.concatenate %0, %2 in 1 : vector<16x16xbf16>, vector<16x112xbf16> -> vector<16x128xbf16>
    %c0_1 = arith.constant 0 : index
    %c0_2 = arith.constant 0 : index
    %c0_3 = arith.constant 0 : index
    %4 = vector.load %arg2[%c0_1, %c0_2, %c0_3] : memref<3x128x128xbf16, #tpu.memory_space<vmem>>, vector<1x128x128xbf16>
    %5 = vector.shape_cast %4 : vector<1x128x128xbf16> to vector<128x128xbf16>
    %cst = arith.constant dense<0.000000e+00> : vector<16x128xf32>
    %6 = tpu.matmul %3, %5, %cst {dimension_numbers = #tpu.dot_dimension_numbers<[1], [0], [0], [1], [0, 0, 1, 1], [], []>} : vector<16x128xbf16>, vector<128x128xbf16>, vector<16x128xf32> -> vector<16x128xf32>
    %c0_4 = arith.constant 0 : index
    %c0_5 = arith.constant 0 : index
    %c0_6 = arith.constant 0 : index
    %7 = vector.load %arg3[%c0_4, %c0_5, %c0_6] : memref<3x1x128xf32, #tpu.memory_space<vmem>>, vector<1x1x128xf32>
    %8 = vector.shape_cast %7 : vector<1x1x128xf32> to vector<1x128xf32>
    %9 = vector.broadcast %8 : vector<1x128xf32> to vector<16x128xf32>
    %10 = arith.addf %6, %9 : vector<16x128xf32>
    %cst_7 = arith.constant 0.000000e+00 : f32
    %11 = vector.broadcast %cst_7 : f32 to vector<16x128xf32>
    %12 = arith.maximumf %10, %11 : vector<16x128xf32>
    %13 = arith.truncf %12 : vector<16x128xf32> to vector<16x128xbf16>
    %c1 = arith.constant 1 : index
    %c0_8 = arith.constant 0 : index
    %c0_9 = arith.constant 0 : index
    %14 = vector.load %arg2[%c1, %c0_8, %c0_9] : memref<3x128x128xbf16, #tpu.memory_space<vmem>>, vector<1x128x128xbf16>
    %15 = vector.shape_cast %14 : vector<1x128x128xbf16> to vector<128x128xbf16>
    %cst_10 = arith.constant dense<0.000000e+00> : vector<16x128xf32>
    %16 = tpu.matmul %13, %15, %cst_10 {dimension_numbers = #tpu.dot_dimension_numbers<[1], [0], [0], [1], [0, 0, 1, 1], [], []>} : vector<16x128xbf16>, vector<128x128xbf16>, vector<16x128xf32> -> vector<16x128xf32>
    %c1_11 = arith.constant 1 : index
    %c0_12 = arith.constant 0 : index
    %c0_13 = arith.constant 0 : index
    %17 = vector.load %arg3[%c1_11, %c0_12, %c0_13] : memref<3x1x128xf32, #tpu.memory_space<vmem>>, vector<1x1x128xf32>
    %18 = vector.shape_cast %17 : vector<1x1x128xf32> to vector<1x128xf32>
    %19 = vector.broadcast %18 : vector<1x128xf32> to vector<16x128xf32>
    %20 = arith.addf %16, %19 : vector<16x128xf32>
    %cst_14 = arith.constant 0.000000e+00 : f32
    %21 = vector.broadcast %cst_14 : f32 to vector<16x128xf32>
    %22 = arith.maximumf %20, %21 : vector<16x128xf32>
    %23 = arith.truncf %22 : vector<16x128xf32> to vector<16x128xbf16>
    %c2 = arith.constant 2 : index
    %c0_15 = arith.constant 0 : index
    %c0_16 = arith.constant 0 : index
    %24 = vector.load %arg2[%c2, %c0_15, %c0_16] : memref<3x128x128xbf16, #tpu.memory_space<vmem>>, vector<1x128x128xbf16>
    %25 = vector.shape_cast %24 : vector<1x128x128xbf16> to vector<128x128xbf16>
    %cst_17 = arith.constant dense<0.000000e+00> : vector<16x128xf32>
    %26 = tpu.matmul %23, %25, %cst_17 {dimension_numbers = #tpu.dot_dimension_numbers<[1], [0], [0], [1], [0, 0, 1, 1], [], []>} : vector<16x128xbf16>, vector<128x128xbf16>, vector<16x128xf32> -> vector<16x128xf32>
    %c2_18 = arith.constant 2 : index
    %c0_19 = arith.constant 0 : index
    %c0_20 = arith.constant 0 : index
    %27 = vector.load %arg3[%c2_18, %c0_19, %c0_20] : memref<3x1x128xf32, #tpu.memory_space<vmem>>, vector<1x1x128xf32>
    %28 = vector.shape_cast %27 : vector<1x1x128xf32> to vector<1x128xf32>
    %29 = vector.broadcast %28 : vector<1x128xf32> to vector<16x128xf32>
    %30 = arith.addf %26, %29 : vector<16x128xf32>
    %c0_21 = arith.constant 0 : index
    %c0_22 = arith.constant 0 : index
    %31 = vector.load %arg4[%c0_21, %c0_22] : memref<16x128xf32, #tpu.memory_space<vmem>>, vector<16x128xf32>
    tpu.vector_store %arg4[%c0_21, %c0_22], %30 {strides = array<i32>} : memref<16x128xf32, #tpu.memory_space<vmem>>, vector<16x128xf32>,
    return
  }
  func.func @transform_0(%arg0: i32) -> (i32, i32) {
    %c0_i32 = arith.constant 0 : i32
    %c0_i32_0 = arith.constant 0 : i32
    return %arg0, %c0_i32 : i32, i32
  }
  func.func @transform_1(%arg0: i32) -> (i32, i32, i32) {
    %c0_i32 = arith.constant 0 : i32
    %c0_i32_0 = arith.constant 0 : i32
    %c0_i32_1 = arith.constant 0 : i32
    %c0_i32_2 = arith.constant 0 : i32
    return %c0_i32, %c0_i32_0, %c0_i32_1 : i32, i32, i32
  }
  func.func @transform_2(%arg0: i32) -> (i32, i32, i32) {
    %c0_i32 = arith.constant 0 : i32
    %c0_i32_0 = arith.constant 0 : i32
    %c0_i32_1 = arith.constant 0 : i32
    %c0_i32_2 = arith.constant 0 : i32
    return %c0_i32, %c0_i32_0, %c0_i32_1 : i32, i32, i32
  }
  func.func @transform_3(%arg0: i32) -> (i32, i32) {
    %c0_i32 = arith.constant 0 : i32
    %c0_i32_0 = arith.constant 0 : i32
    return %arg0, %c0_i32 : i32, i32
  }
}

</mosaic_0001>

<bundles_post_ra>
// kernel: dqn_forward.1
= control target key start
LH: loop header
LB: loop body
LE: loop exit
PB: predicated region body
PF: predicated region fallthrough
CT: control target
= control target key end

     0   :  { %8 = vsyncpa [#allocation3], 0  ;;  %s700_s0 = inlined_call_operand.vmem [shape: bf16[16,16], index: 0, kind: input, shape index: {}]   ;;  %s701_s1 = inlined_call_operand.hbm [shape: bf16[3,128,128], index: 1, kind: input, shape index: {}]   ;;  %s702_s2 = inlined_call_operand.vmem [shape: f32[3,1,128], index: 2, kind: input, shape index: {}]   ;;  %s703_s3 = inlined_call_operand.hbm [shape: f32[16,128], index: 3, kind: output, shape index: {}]  }
   0x1   :  { %9 = vsyncpa [#allocation4], 0  ;;  %s606_s12 = smov [#allocation2]   ;;  %s558_s16 = scalar_lea.hbm %s701_s1, 3072 }
   0x2   :  { %s17_s13 = sshll.u32 %s606_s12, 4  ;;  %p559_p0 = scmp.ne.s32.totalorder %s701_s1, %s558_s16  ;;  %s18_s13 = int_to_ptr.vmem [resolvable:$true] %s17_s13 }
   0x3   :  { %p562_p1 = scmp.lt.u32.totalorder %s558_s16, %s701_s1 }
   0x5   :  { %p564_p2 = pnand %p562_p1, %p559_p0 }
   0x7   :  { %567 = shalt.err (!%p564_p2)
}
   0x8   :  { %s568_s21 = scalar_lea.vmem %s18_s13, 3072  ;;  %p573_p4 = scmp.lt.s32.totalorder %s18_s13, %s18_s13 }
   0x9   :  { %p569_p3 = scmp.ne.s32.totalorder %s18_s13, %s568_s21  ;;  %p574_p5 = scmp.lt.s32.totalorder %s568_s21, %s568_s21 }
   0xb   :  { %p575_p6 = por %p574_p5, %p573_p4 }
   0xd   :  { %p576_p7 = pnand %p575_p6, %p569_p3 }
   0xf   :  { %579 = shalt.err (!%p576_p7)
}
  0x10   :  { %s607_s22 = smov 64   ;;  %s608_s23 = smov 4  }
  0x11   :  { %23 = dma.hbm_to_vmem [thread:$0]  %s701_s1, 3072, %s18_s13, [#allocation3], %s607_s22, %s607_s22, %s608_s23  }
  0x12   :  { %602 = dma.done.wait [#allocation3], 3072  }
  0x13   :  { %603 = vsyncadd [#allocation3], 4294964224  ;;  %v609_v0 = vmov 0.0   ;;  %vm610_vm0 = vmmov 0   ;;  %v533_v1 = vld [vmem:[#allocation2] sm:$0xff]   ;;  %v534_v2 = vld [vmem:[#allocation2 + $0x8] sm:$0xff]  }
  0x14   :  { %465 = vmatprep.subr.bf16.mxu0 %v609_v0  ;;  %481 = vmatprep.mubr.msk.bf16.mxu0 %vm610_vm0, %v609_v0  ;;  %v535_v3 = vld [vmem:[#allocation2 + $0x10] sm:$0xff]   ;;  %v542_v4 = vld [vmem:[#allocation2 + $0x40] sm:$0xff]   ;;  %v536_v5 = vld [vmem:[#allocation2 + $0x18] sm:$0xff]   ;;  %vm37_vm1 = vcmask 130048   ;;  %s611_s5 = smov [#allocation5]  }
  0x15   :  { %485 = vmatprep.subr.bf16.mxu1 %v609_v0  ;;  %501 = vmatprep.mubr.msk.bf16.mxu1 %vm610_vm0, %v609_v0  ;;  %v543_v6 = vld [vmem:[#allocation2 + $0x48] sm:$0xff]   ;;  %v537_v7 = vld [vmem:[#allocation2 + $0x20] sm:$0xff]   ;;  %v544_v8 = vld [vmem:[#allocation2 + $0x50] sm:$0xff]   ;;  %s395_s6 = sshll.u32 %s611_s5, 4  ;;  %s396_s6 = int_to_ptr.vmem [resolvable:$true] %s395_s6 }
  0x16   :  { %466 = vmatpush3.bf16.msra.mxu0 %v533_v1  ;;  %486 = vmatpush3.bf16.msra.mxu1 %v542_v4  ;;  %v538_v9 = vld [vmem:[#allocation2 + $0x28] sm:$0xff]   ;;  %v545_v10 = vld [vmem:[#allocation2 + $0x58] sm:$0xff]   ;;  %v539_v11 = vld [vmem:[#allocation2 + $0x30] sm:$0xff]   ;;  %s580_s7 = scalar_lea.vmem %s396_s6, 256  ;;  %p585_p9 = scmp.lt.s32.totalorder %s396_s6, %s396_s6 }
  0x17   :  { %467 = vmatprep.subr.bf16.mxu0 %v609_v0  ;;  %487 = vmatprep.subr.bf16.mxu1 %v609_v0  ;;  %v546_v12 = vld [vmem:[#allocation2 + $0x60] sm:$0xff]   ;;  %v540_v13 = vld [vmem:[#allocation2 + $0x38] sm:$0xff]   ;;  %v547_v14 = vld [vmem:[#allocation2 + $0x68] sm:$0xff]   ;;  %p581_p8 = scmp.ne.s32.totalorder %s396_s6, %s580_s7  ;;  %p586_p10 = scmp.lt.s32.totalorder %s580_s7, %s580_s7 }
  0x18   :  { %v541_v15 = vld [vmem:[%s700_s0] sm:$0xff]   ;;  %v548_v16 = vld [vmem:[#allocation2 + $0x70] sm:$0xff]   ;;  %v549_v17 = vld [vmem:[#allocation2 + $0x78] sm:$0xff]  }
  0x19   :  { %v550_v18 = vld [vmem:[#allocation2 + $0x80] sm:$0xff]   ;;  %v551_v19 = vld [vmem:[#allocation2 + $0x88] sm:$0xff]   ;;  %v552_v20 = vld [vmem:[#allocation2 + $0x90] sm:$0xff]   ;;  %p587_p11 = por %p586_p10, %p585_p9 }
  0x1a   :  { %468 = vmatpush3.bf16.msra.mxu0 %v534_v2  ;;  %488 = vmatpush3.bf16.msra.mxu1 %v543_v6  ;;  %v553_v21 = vld [vmem:[#allocation2 + $0x98] sm:$0xff]   ;;  %v554_v22 = vld [vmem:[#allocation2 + $0xa0] sm:$0xff]   ;;  %v555_v23 = vld [vmem:[#allocation2 + $0xa8] sm:$0xff]  }
  0x1b   :  { %469 = vmatprep.subr.bf16.mxu0 %v609_v0  ;;  %489 = vmatprep.subr.bf16.mxu1 %v609_v0  ;;  %v408_v24 = vld [vmem:[%s702_s2] ss:$0 sm:$0xff]  ;;  %v556_v34 = vld [vmem:[#allocation2 + $0xb0] sm:$0xff]   ;;  %v557_v35 = vld [vmem:[#allocation2 + $0xb8] sm:$0xff]   ;;  %p588_p12 = pnand %p587_p11, %p581_p8 }
  0x1c   :  { %v419_v36 = vld [vmem:[%s702_s2 + $0x1] ss:$0 sm:$0xff]  ;;  %v429_v46 = vld [vmem:[%s702_s2 + $0x2] ss:$0 sm:$0xff] }
  0x1e   :  { %470 = vmatpush3.bf16.msra.mxu0 %v535_v3  ;;  %490 = vmatpush3.bf16.msra.mxu1 %v544_v8 }
  0x1f   :  { %471 = vmatprep.subr.bf16.mxu0 %v609_v0  ;;  %491 = vmatprep.subr.bf16.mxu1 %v609_v0 }
  0x22   :  { %472 = vmatpush3.bf16.msra.mxu0 %v536_v5  ;;  %492 = vmatpush3.bf16.msra.mxu1 %v545_v10 }
  0x23   :  { %473 = vmatprep.subr.bf16.mxu0 %v609_v0  ;;  %493 = vmatprep.subr.bf16.mxu1 %v609_v0 }
  0x26   :  { %474 = vmatpush3.bf16.msra.mxu0 %v537_v7  ;;  %494 = vmatpush3.bf16.msra.mxu1 %v546_v12 }
  0x27   :  { %475 = vmatprep.subr.bf16.mxu0 %v609_v0  ;;  %495 = vmatprep.subr.bf16.mxu1 %v609_v0 }
  0x2a   :  { %476 = vmatpush3.bf16.msra.mxu0 %v538_v9  ;;  %496 = vmatpush3.bf16.msra.mxu1 %v547_v14 }
  0x2b   :  { %477 = vmatprep.subr.bf16.mxu0 %v609_v0  ;;  %497 = vmatprep.subr.bf16.mxu1 %v609_v0 }
  0x2e   :  { %478 = vmatpush3.bf16.msra.mxu0 %v539_v11  ;;  %498 = vmatpush3.bf16.msra.mxu1 %v548_v16 }
  0x2f   :  { %479 = vmatprep.subr.bf16.mxu0 %v609_v0  ;;  %499 = vmatprep.subr.bf16.mxu1 %v609_v0 }
  0x32   :  { %480 = vmatpush3.bf16.msra.mxu0 %v540_v13  ;;  %500 = vmatpush3.bf16.msra.mxu1 %v549_v17 }
  0x33   :  { %505 = vmatprep.subr.bf16.mxu0 %v609_v0 }
  0x35   :  { %482 = vmatmul.mubr.msk.bf16.vlgmr.msra.gmra.mrb[0].mxu0 %vm37_vm1, %v541_v15 }
  0x36   :  { %521 = vmatprep.mubr.msk.bf16.mxu0 %vm610_vm0, %v609_v0  ;;  %506 = vmatpush3.bf16.msra.mxu0 %v550_v18 }
  0x37   :  { %507 = vmatprep.subr.bf16.mxu0 %v609_v0 }
  0x3a   :  { %508 = vmatpush3.bf16.msra.mxu0 %v551_v19 }
  0x3b   :  { %509 = vmatprep.subr.bf16.mxu0 %v609_v0 }
  0x3e   :  { %510 = vmatpush3.bf16.msra.mxu0 %v552_v20 }
  0x3f   :  { %511 = vmatprep.subr.bf16.mxu0 %v609_v0 }
  0x42   :  { %512 = vmatpush3.bf16.msra.mxu0 %v553_v21 }
  0x43   :  { %513 = vmatprep.subr.bf16.mxu0 %v609_v0 }
  0x46   :  { %514 = vmatpush3.bf16.msra.mxu0 %v554_v22 }
  0x47   :  { %515 = vmatprep.subr.bf16.mxu0 %v609_v0 }
  0x4a   :  { %516 = vmatpush3.bf16.msra.mxu0 %v555_v23 }
  0x4b   :  { %517 = vmatprep.subr.bf16.mxu0 %v609_v0 }
  0x4e   :  { %518 = vmatpush3.bf16.msra.mxu0 %v556_v34 }
  0x4f   :  { %519 = vmatprep.subr.bf16.mxu0 %v609_v0 }
  0x52   :  { %520 = vmatpush3.bf16.msra.mxu0 %v557_v35 }
 0x108   :  { %v147_v25 = vpop.f32.mrb[0].mxu0 }
 0x109   :  { %v148_v26 = vadd.f32 %v408_v24, %v147_v25  ;;  %v483_v27 = vpop.f32.mrb[1].mxu0 }
 0x10a   :  { %v150_v28 = vpop.f32.mrb[2].mxu0 }
 0x10b   :  { %v151_v29 = vadd.f32 %v408_v24, %v150_v28  ;;  %v484_v30 = vpop.f32.mrb[3].mxu0  ;;  %v154_v31 = vmax.f32 %v148_v26, 0.0 }
 0x10d   :  { %v155_v32 = vmax.f32 %v151_v29, 0.0 }
 0x10f   :  { %v156_v33 = vpack.c.bf16 %v155_v32, %v154_v31 }
 0x111   :  { %502 = vmatmul.mubr.bf16.vlgmr.msra.gmra.mrb[0].mxu1 %v156_v33 }
 0x1e4   :  { %v264_v37 = vpop.f32.mrb[0].mxu1 }
 0x1e5   :  { %v265_v38 = vadd.f32 %v419_v36, %v264_v37  ;;  %v503_v39 = vpop.f32.mrb[1].mxu1 }
 0x1e6   :  { %v267_v40 = vpop.f32.mrb[2].mxu1 }
 0x1e7   :  { %v268_v41 = vadd.f32 %v419_v36, %v267_v40  ;;  %v504_v42 = vpop.f32.mrb[3].mxu1  ;;  %v271_v43 = vmax.f32 %v265_v38, 0.0 }
 0x1e9   :  { %v272_v44 = vmax.f32 %v268_v41, 0.0 }
 0x1eb   :  { %v273_v45 = vpack.c.bf16 %v272_v44, %v271_v43 }
 0x1ed   :  { %522 = vmatmul.mubr.bf16.vlgmr.msra.gmra.mrb[4].mxu0 %v273_v45 }
 0x2c0   :  { %v381_v47 = vpop.f32.mrb[4].mxu0 }
 0x2c1   :  { %v382_v48 = vadd.f32 %v429_v46, %v381_v47  ;;  %v523_v49 = vpop.f32.mrb[5].mxu0 }
 0x2c2   :  { %v384_v50 = vpop.f32.mrb[6].mxu0 }
 0x2c3   :  { %388 = vst [vmem:[#allocation5] sm:$0xff] %v382_v48  ;;  %v385_v51 = vadd.f32 %v429_v46, %v384_v50  ;;  %v524_v52 = vpop.f32.mrb[7].mxu0 }
 0x2c5   :  { %389 = vst [vmem:[#allocation5 + $0x8] sm:$0xff] %v385_v51 }
 0x2c6   :  { %591 = shalt.err (!%p588_p12)
}
 0x2c7   :  { %s592_s9 = scalar_lea.hbm %s703_s3, 256 }
 0x2c8   :  { %p593_p13 = scmp.ne.s32.totalorder %s703_s3, %s592_s9  ;;  %p596_p0 = scmp.lt.u32.totalorder %s592_s9, %s703_s3 }
 0x2ca   :  { %p598_p1 = pnand %p596_p0, %p593_p13 }
 0x2cc   :  { %601 = shalt.err (!%p598_p1)
}
 0x2cd   :  { %s612_s14 = smov 128   ;;  %s613_s15 = smov 8  }
 0x2ce   :  { %401 = dma.vmem_to_hbm [thread:$0]  %s396_s6, 256, %s703_s3, [#allocation4], %s612_s14, %s612_s14, %s613_s15  }
 0x2cf   :  { %604 = dma.done.wait [#allocation4], 256  }
 0x2d0   :  { %605 = vsyncadd [#allocation4], 4294967040 }
 0x2d1   :  { %405 = vsyncpa [#allocation3], 1 }
 0x2d2   :  { %406 = vsyncpa [#allocation4], 1 }

</bundles_post_ra>
